<compile_context>
chip_gen: v5e
topology: v5e:2x2
jax: 0.10.0
libtpu: 0.0.40
codegen_flags: <defaults>
</compile_context>

<pallas_src>
import functools
import math

import jax
import jax.numpy as jnp
from jax import lax
from jax.experimental import pallas as pl
from jax.experimental.pallas import tpu as pltpu


def mha_kernel(q_ref, k_ref, v_ref,
               wqT_ref, wkT_ref, wvT_ref, woT_ref,
               bqkv_ref, bo_ref,
               o_ref, ctx_ref, *, num_heads, d_k):
    # q_ref/k_ref/v_ref blocks: (1, S, D) bf16; weights (D, D) bf16; biases f32.
    scale = 1.0 / math.sqrt(d_k)
    q = q_ref[0]            # (S, D) bf16
    k = k_ref[0]
    v = v_ref[0]

    # Full-width projections: one (S,D)@(D,D) matmul each, f32 accumulate,
    # bias added once.  1/sqrt(d_k) is folded into Q here (cheaper than
    # scaling the (S,S) scores per head).
    Q = (jnp.dot(q, wqT_ref[...], preferred_element_type=jnp.float32)
         + bqkv_ref[0:1, :]) * scale
    K = jnp.dot(k, wkT_ref[...], preferred_element_type=jnp.float32) + bqkv_ref[1:2, :]
    V = jnp.dot(v, wvT_ref[...], preferred_element_type=jnp.float32) + bqkv_ref[2:3, :]
    Qb = Q.astype(jnp.bfloat16)
    Kb = K.astype(jnp.bfloat16)
    Vb = V.astype(jnp.bfloat16)

    # Per-head attention; H is small -> static unroll with static lane slices.
    for h in range(num_heads):
        lo = h * d_k
        qh = Qb[:, lo:lo + d_k]          # (S, d_k) bf16
        kh = Kb[:, lo:lo + d_k]
        vh = Vb[:, lo:lo + d_k]
        # scores = qh @ kh^T without materializing the transpose.
        s = lax.dot_general(qh, kh, (((1,), (1,)), ((), ())),
                            preferred_element_type=jnp.float32)      # (S, S) f32
        s = s - jnp.max(s, axis=-1, keepdims=True)
        e = jnp.exp(s)
        attn = e * pl.reciprocal(jnp.sum(e, axis=-1, keepdims=True), approx=True)
        ctx = jnp.dot(attn.astype(jnp.bfloat16), vh,
                      preferred_element_type=jnp.float32)             # (S, d_k) f32
        ctx_ref[:, lo:lo + d_k] = ctx.astype(jnp.bfloat16)

    # Output projection: one wide (S,D)@(D,D) matmul instead of H skinny ones.
    out = jnp.dot(ctx_ref[...], woT_ref[...],
                  preferred_element_type=jnp.float32) + bo_ref[...]
    o_ref[0] = out


def multi_head_attention(q, k, v, params, num_heads):
    B, S, D = q.shape
    d_k = D // num_heads
    Wq, bq, Wk, bk, Wv, bv, Wo, bo = params

    # nn.Linear: y = x @ W.T + b.  Pre-transpose + pre-cast weights to bf16 so
    # the kernel's matmuls hit the bf16 MXU path and weight DMAs are half-size.
    def prep_w(W):
        return jnp.transpose(W).astype(jnp.bfloat16)      # (D, D) bf16

    WqT, WkT, WvT, WoT = prep_w(Wq), prep_w(Wk), prep_w(Wv), prep_w(Wo)
    bqkv = jnp.stack([bq, bk, bv], axis=0).astype(jnp.float32)   # (3, D) f32
    bo2 = bo.reshape(1, D).astype(jnp.float32)                   # (1, D) f32
    qb = q.astype(jnp.bfloat16)
    kb = k.astype(jnp.bfloat16)
    vb = v.astype(jnp.bfloat16)

    kernel = functools.partial(mha_kernel, num_heads=num_heads, d_k=d_k)

    def full_spec(shape):
        return pl.BlockSpec(shape, lambda b: (0,) * len(shape))

    grid_spec = pltpu.PrefetchScalarGridSpec(
        num_scalar_prefetch=0,
        grid=(B,),
        in_specs=[
            pl.BlockSpec((1, S, D), lambda b: (b, 0, 0)),   # q (bf16)
            pl.BlockSpec((1, S, D), lambda b: (b, 0, 0)),   # k (bf16)
            pl.BlockSpec((1, S, D), lambda b: (b, 0, 0)),   # v (bf16)
            full_spec((D, D)),                              # Wq^T (bf16)
            full_spec((D, D)),                              # Wk^T (bf16)
            full_spec((D, D)),                              # Wv^T (bf16)
            full_spec((D, D)),                              # Wo^T (bf16)
            full_spec((3, D)),                              # [bq; bk; bv] (f32)
            full_spec((1, D)),                              # bo (f32)
        ],
        out_specs=pl.BlockSpec((1, S, D), lambda b: (b, 0, 0)),
        scratch_shapes=[pltpu.VMEM((S, D), jnp.bfloat16)],  # concat'd head contexts
    )

    return pl.pallas_call(
        kernel,
        out_shape=jax.ShapeDtypeStruct((B, S, D), jnp.float32),
        grid_spec=grid_spec,
        compiler_params=pltpu.CompilerParams(
            dimension_semantics=("parallel",),
            vmem_limit_bytes=32 * 1024 * 1024,
        ),
    )(qb, kb, vb, WqT, WkT, WvT, WoT, bqkv, bo2)


def ref_mha(q, k, v, params, num_heads):
    # Pure-JAX f32 reference reproducing the PyTorch forward exactly (mask=None).
    Wq, bq, Wk, bk, Wv, bv, Wo, bo = params
    B, S, D = q.shape
    d_k = D // num_heads

    def lin(x, W, b):
        return x @ W.T + b

    qp = lin(q, Wq, bq).reshape(B, S, num_heads, d_k).transpose(0, 2, 1, 3)
    kp = lin(k, Wk, bk).reshape(B, S, num_heads, d_k).transpose(0, 2, 1, 3)
    vp = lin(v, Wv, bv).reshape(B, S, num_heads, d_k).transpose(0, 2, 1, 3)
    s = jnp.einsum('bhqd,bhkd->bhqk', qp, kp) / math.sqrt(d_k)
    attn = jax.nn.softmax(s, axis=-1)
    ctx = jnp.einsum('bhqk,bhkd->bhqd', attn, vp)
    ctx = ctx.transpose(0, 2, 1, 3).reshape(B, S, D)
    return lin(ctx, Wo, bo)


if __name__ == "__main__":
    B, S, D, H = 2, 8, 32, 4

    key = jax.random.PRNGKey(0)
    keys = jax.random.split(key, 11)
    bound = 1.0 / math.sqrt(D)  # PyTorch nn.Linear default init range

    q = jax.random.normal(keys[0], (B, S, D), jnp.float32)
    k = jax.random.normal(keys[1], (B, S, D), jnp.float32)
    v = jax.random.normal(keys[2], (B, S, D), jnp.float32)

    Wq = jax.random.uniform(keys[3], (D, D), jnp.float32, -bound, bound)
    bq = jax.random.uniform(keys[4], (D,), jnp.float32, -bound, bound)
    Wk = jax.random.uniform(keys[5], (D, D), jnp.float32, -bound, bound)
    bk = jax.random.uniform(keys[6], (D,), jnp.float32, -bound, bound)
    Wv = jax.random.uniform(keys[7], (D, D), jnp.float32, -bound, bound)
    bv = jax.random.uniform(keys[8], (D,), jnp.float32, -bound, bound)
    Wo = jax.random.uniform(keys[9], (D, D), jnp.float32, -bound, bound)
    bo = jax.random.uniform(keys[10], (D,), jnp.float32, -bound, bound)
    params = (Wq, bq, Wk, bk, Wv, bv, Wo, bo)

    out = multi_head_attention(q, k, v, params, H)
    out = jax.block_until_ready(out)

    ref = ref_mha(q, k, v, params, H)
    assert out.shape == (B, S, D)
    # Tolerance loosened vs the f32 reference because matmul operands are bf16
    # (f32 accumulation); bug-level errors would be orders of magnitude larger.
    assert jnp.allclose(out, ref, atol=3e-2, rtol=3e-2), "mismatch vs reference"

    print("KERNEL_OK")
</pallas_src>

<mosaic_0001>
module attributes {stable_mosaic.version = 11 : i64} {
  func.func @mha_kernel(%arg0: i32, %arg1: memref<1x8x32xbf16, #tpu.memory_space<vmem>>, %arg2: memref<1x8x32xbf16, #tpu.memory_space<vmem>>, %arg3: memref<1x8x32xbf16, #tpu.memory_space<vmem>>, %arg4: memref<32x32xbf16, #tpu.memory_space<vmem>>, %arg5: memref<32x32xbf16, #tpu.memory_space<vmem>>, %arg6: memref<32x32xbf16, #tpu.memory_space<vmem>>, %arg7: memref<32x32xbf16, #tpu.memory_space<vmem>>, %arg8: memref<3x32xf32, #tpu.memory_space<vmem>>, %arg9: memref<1x32xf32, #tpu.memory_space<vmem>>, %arg10: memref<1x8x32xf32, #tpu.memory_space<vmem>>, %arg11: memref<8x32xbf16, #tpu.memory_space<vmem>>) attributes {dimension_semantics = [#tpu.dimension_semantics<parallel>], iteration_bounds = array<i64: 2>, scalar_prefetch = 0 : i64, scratch_operands = 1 : i64, tpu.core_type = #tpu.core_type<tc>, window_params = [{transform_indices = @transform_0, window_bounds = array<i64: 1, 8, 32>}, {transform_indices = @transform_1, window_bounds = array<i64: 1, 8, 32>}, {transform_indices = @transform_2, window_bounds = array<i64: 1, 8, 32>}, {pipeline_mode = #tpu.pipeline_mode<synchronous>, transform_indices = @transform_3, window_bounds = array<i64: 32, 32>}, {pipeline_mode = #tpu.pipeline_mode<synchronous>, transform_indices = @transform_4, window_bounds = array<i64: 32, 32>}, {pipeline_mode = #tpu.pipeline_mode<synchronous>, transform_indices = @transform_5, window_bounds = array<i64: 32, 32>}, {pipeline_mode = #tpu.pipeline_mode<synchronous>, transform_indices = @transform_6, window_bounds = array<i64: 32, 32>}, {pipeline_mode = #tpu.pipeline_mode<synchronous>, transform_indices = @transform_7, window_bounds = array<i64: 3, 32>}, {pipeline_mode = #tpu.pipeline_mode<synchronous>, transform_indices = @transform_8, window_bounds = array<i64: 1, 32>}, {transform_indices = @transform_9, window_bounds = array<i64: 1, 8, 32>}]} {
    %c0 = arith.constant 0 : index
    %c0_0 = arith.constant 0 : index
    %c0_1 = arith.constant 0 : index
    %0 = vector.load %arg1[%c0, %c0_0, %c0_1] : memref<1x8x32xbf16, #tpu.memory_space<vmem>>, vector<1x8x32xbf16>
    %1 = vector.shape_cast %0 : vector<1x8x32xbf16> to vector<8x32xbf16>
    %c0_2 = arith.constant 0 : index
    %c0_3 = arith.constant 0 : index
    %c0_4 = arith.constant 0 : index
    %2 = vector.load %arg2[%c0_2, %c0_3, %c0_4] : memref<1x8x32xbf16, #tpu.memory_space<vmem>>, vector<1x8x32xbf16>
    %3 = vector.shape_cast %2 : vector<1x8x32xbf16> to vector<8x32xbf16>
    %c0_5 = arith.constant 0 : index
    %c0_6 = arith.constant 0 : index
    %c0_7 = arith.constant 0 : index
    %4 = vector.load %arg3[%c0_5, %c0_6, %c0_7] : memref<1x8x32xbf16, #tpu.memory_space<vmem>>, vector<1x8x32xbf16>
    %5 = vector.shape_cast %4 : vector<1x8x32xbf16> to vector<8x32xbf16>
    %c0_8 = arith.constant 0 : index
    %c0_9 = arith.constant 0 : index
    %6 = vector.load %arg4[%c0_8, %c0_9] : memref<32x32xbf16, #tpu.memory_space<vmem>>, vector<32x32xbf16>
    %cst = arith.constant dense<0.000000e+00> : vector<8x32xf32>
    %7 = tpu.matmul %1, %6, %cst {dimension_numbers = #tpu.dot_dimension_numbers<[1], [0], [0], [1], [0, 0, 1, 1], [], []>} : vector<8x32xbf16>, vector<32x32xbf16>, vector<8x32xf32> -> vector<8x32xf32>
    %c0_10 = arith.constant 0 : index
    %c0_11 = arith.constant 0 : index
    %8 = vector.load %arg8[%c0_10, %c0_11] : memref<3x32xf32, #tpu.memory_space<vmem>>, vector<1x32xf32>
    %9 = vector.broadcast %8 : vector<1x32xf32> to vector<8x32xf32>
    %10 = arith.addf %7, %9 : vector<8x32xf32>
    %cst_12 = arith.constant 0.353553385 : f32
    %11 = vector.broadcast %cst_12 : f32 to vector<8x32xf32>
    %12 = arith.mulf %10, %11 : vector<8x32xf32>
    %c0_13 = arith.constant 0 : index
    %c0_14 = arith.constant 0 : index
    %13 = vector.load %arg5[%c0_13, %c0_14] : memref<32x32xbf16, #tpu.memory_space<vmem>>, vector<32x32xbf16>
    %cst_15 = arith.constant dense<0.000000e+00> : vector<8x32xf32>
    %14 = tpu.matmul %3, %13, %cst_15 {dimension_numbers = #tpu.dot_dimension_numbers<[1], [0], [0], [1], [0, 0, 1, 1], [], []>} : vector<8x32xbf16>, vector<32x32xbf16>, vector<8x32xf32> -> vector<8x32xf32>
    %c1 = arith.constant 1 : index
    %c0_16 = arith.constant 0 : index
    %15 = vector.load %arg8[%c1, %c0_16] : memref<3x32xf32, #tpu.memory_space<vmem>>, vector<1x32xf32>
    %16 = vector.broadcast %15 : vector<1x32xf32> to vector<8x32xf32>
    %17 = arith.addf %14, %16 : vector<8x32xf32>
    %c0_17 = arith.constant 0 : index
    %c0_18 = arith.constant 0 : index
    %18 = vector.load %arg6[%c0_17, %c0_18] : memref<32x32xbf16, #tpu.memory_space<vmem>>, vector<32x32xbf16>
    %cst_19 = arith.constant dense<0.000000e+00> : vector<8x32xf32>
    %19 = tpu.matmul %5, %18, %cst_19 {dimension_numbers = #tpu.dot_dimension_numbers<[1], [0], [0], [1], [0, 0, 1, 1], [], []>} : vector<8x32xbf16>, vector<32x32xbf16>, vector<8x32xf32> -> vector<8x32xf32>
    %c2 = arith.constant 2 : index
    %c0_20 = arith.constant 0 : index
    %20 = vector.load %arg8[%c2, %c0_20] : memref<3x32xf32, #tpu.memory_space<vmem>>, vector<1x32xf32>
    %21 = vector.broadcast %20 : vector<1x32xf32> to vector<8x32xf32>
    %22 = arith.addf %19, %21 : vector<8x32xf32>
    %23 = arith.truncf %12 : vector<8x32xf32> to vector<8x32xbf16>
    %24 = arith.truncf %17 : vector<8x32xf32> to vector<8x32xbf16>
    %25 = arith.truncf %22 : vector<8x32xf32> to vector<8x32xbf16>
    %26 = vector.extract_strided_slice %23 {offsets = [0, 0], sizes = [8, 8], strides = [1, 1]} : vector<8x32xbf16> to vector<8x8xbf16>
    %27 = vector.extract_strided_slice %24 {offsets = [0, 0], sizes = [8, 8], strides = [1, 1]} : vector<8x32xbf16> to vector<8x8xbf16>
    %28 = vector.extract_strided_slice %25 {offsets = [0, 0], sizes = [8, 8], strides = [1, 1]} : vector<8x32xbf16> to vector<8x8xbf16>
    %cst_21 = arith.constant dense<0.000000e+00> : vector<8x8xf32>
    %29 = tpu.matmul %26, %27, %cst_21 {dimension_numbers = #tpu.dot_dimension_numbers<[1], [1], [0], [0], [0, 0, 1, 0], [], []>} : vector<8x8xbf16>, vector<8x8xbf16>, vector<8x8xf32> -> vector<8x8xf32>
    %cst_22 = arith.constant dense<0xFF800000> : vector<8xf32>
    %30 = vector.multi_reduction <maximumf>, %29, %cst_22 [1] : vector<8x8xf32> to vector<8xf32>
    %31 = vector.shape_cast %30 : vector<8xf32> to vector<8x1xf32>
    %32 = vector.broadcast %31 : vector<8x1xf32> to vector<8x8xf32>
    %33 = arith.subf %29, %32 : vector<8x8xf32>
    %34 = math.exp %33 : vector<8x8xf32>
    %cst_23 = arith.constant dense<0.000000e+00> : vector<8xf32>
    %35 = vector.multi_reduction <add>, %34, %cst_23 [1] : vector<8x8xf32> to vector<8xf32>
    %36 = vector.shape_cast %35 : vector<8xf32> to vector<8x1xf32>
    %37 = tpu.reciprocal %36 {approx = true} : vector<8x1xf32> -> vector<8x1xf32>
    %38 = vector.broadcast %37 : vector<8x1xf32> to vector<8x8xf32>
    %39 = arith.mulf %34, %38 : vector<8x8xf32>
    %40 = arith.truncf %39 : vector<8x8xf32> to vector<8x8xbf16>
    %cst_24 = arith.constant dense<0.000000e+00> : vector<8x8xf32>
    %41 = tpu.matmul %40, %28, %cst_24 {dimension_numbers = #tpu.dot_dimension_numbers<[1], [0], [0], [1], [0, 0, 1, 1], [], []>} : vector<8x8xbf16>, vector<8x8xbf16>, vector<8x8xf32> -> vector<8x8xf32>
    %42 = arith.truncf %41 : vector<8x8xf32> to vector<8x8xbf16>
    %c0_25 = arith.constant 0 : index
    %c0_26 = arith.constant 0 : index
    %43 = vector.load %arg11[%c0_25, %c0_26] : memref<8x32xbf16, #tpu.memory_space<vmem>>, vector<8x8xbf16>
    tpu.vector_store %arg11[%c0_25, %c0_26], %42 {strides = array<i32>} : memref<8x32xbf16, #tpu.memory_space<vmem>>, vector<8x8xbf16>,
    %44 = vector.extract_strided_slice %23 {offsets = [0, 8], sizes = [8, 8], strides = [1, 1]} : vector<8x32xbf16> to vector<8x8xbf16>
    %45 = vector.extract_strided_slice %24 {offsets = [0, 8], sizes = [8, 8], strides = [1, 1]} : vector<8x32xbf16> to vector<8x8xbf16>
    %46 = vector.extract_strided_slice %25 {offsets = [0, 8], sizes = [8, 8], strides = [1, 1]} : vector<8x32xbf16> to vector<8x8xbf16>
    %cst_27 = arith.constant dense<0.000000e+00> : vector<8x8xf32>
    %47 = tpu.matmul %44, %45, %cst_27 {dimension_numbers = #tpu.dot_dimension_numbers<[1], [1], [0], [0], [0, 0, 1, 0], [], []>} : vector<8x8xbf16>, vector<8x8xbf16>, vector<8x8xf32> -> vector<8x8xf32>
    %cst_28 = arith.constant dense<0xFF800000> : vector<8xf32>
    %48 = vector.multi_reduction <maximumf>, %47, %cst_28 [1] : vector<8x8xf32> to vector<8xf32>
    %49 = vector.shape_cast %48 : vector<8xf32> to vector<8x1xf32>
    %50 = vector.broadcast %49 : vector<8x1xf32> to vector<8x8xf32>
    %51 = arith.subf %47, %50 : vector<8x8xf32>
    %52 = math.exp %51 : vector<8x8xf32>
    %cst_29 = arith.constant dense<0.000000e+00> : vector<8xf32>
    %53 = vector.multi_reduction <add>, %52, %cst_29 [1] : vector<8x8xf32> to vector<8xf32>
    %54 = vector.shape_cast %53 : vector<8xf32> to vector<8x1xf32>
    %55 = tpu.reciprocal %54 {approx = true} : vector<8x1xf32> -> vector<8x1xf32>
    %56 = vector.broadcast %55 : vector<8x1xf32> to vector<8x8xf32>
    %57 = arith.mulf %52, %56 : vector<8x8xf32>
    %58 = arith.truncf %57 : vector<8x8xf32> to vector<8x8xbf16>
    %cst_30 = arith.constant dense<0.000000e+00> : vector<8x8xf32>
    %59 = tpu.matmul %58, %46, %cst_30 {dimension_numbers = #tpu.dot_dimension_numbers<[1], [0], [0], [1], [0, 0, 1, 1], [], []>} : vector<8x8xbf16>, vector<8x8xbf16>, vector<8x8xf32> -> vector<8x8xf32>
    %60 = arith.truncf %59 : vector<8x8xf32> to vector<8x8xbf16>
    %c0_31 = arith.constant 0 : index
    %c8 = arith.constant 8 : index
    %61 = vector.load %arg11[%c0_31, %c8] : memref<8x32xbf16, #tpu.memory_space<vmem>>, vector<8x8xbf16>
    tpu.vector_store %arg11[%c0_31, %c8], %60 {strides = array<i32>} : memref<8x32xbf16, #tpu.memory_space<vmem>>, vector<8x8xbf16>,
    %62 = vector.extract_strided_slice %23 {offsets = [0, 16], sizes = [8, 8], strides = [1, 1]} : vector<8x32xbf16> to vector<8x8xbf16>
    %63 = vector.extract_strided_slice %24 {offsets = [0, 16], sizes = [8, 8], strides = [1, 1]} : vector<8x32xbf16> to vector<8x8xbf16>
    %64 = vector.extract_strided_slice %25 {offsets = [0, 16], sizes = [8, 8], strides = [1, 1]} : vector<8x32xbf16> to vector<8x8xbf16>
    %cst_32 = arith.constant dense<0.000000e+00> : vector<8x8xf32>
    %65 = tpu.matmul %62, %63, %cst_32 {dimension_numbers = #tpu.dot_dimension_numbers<[1], [1], [0], [0], [0, 0, 1, 0], [], []>} : vector<8x8xbf16>, vector<8x8xbf16>, vector<8x8xf32> -> vector<8x8xf32>
    %cst_33 = arith.constant dense<0xFF800000> : vector<8xf32>
    %66 = vector.multi_reduction <maximumf>, %65, %cst_33 [1] : vector<8x8xf32> to vector<8xf32>
    %67 = vector.shape_cast %66 : vector<8xf32> to vector<8x1xf32>
    %68 = vector.broadcast %67 : vector<8x1xf32> to vector<8x8xf32>
    %69 = arith.subf %65, %68 : vector<8x8xf32>
    %70 = math.exp %69 : vector<8x8xf32>
    %cst_34 = arith.constant dense<0.000000e+00> : vector<8xf32>
    %71 = vector.multi_reduction <add>, %70, %cst_34 [1] : vector<8x8xf32> to vector<8xf32>
    %72 = vector.shape_cast %71 : vector<8xf32> to vector<8x1xf32>
    %73 = tpu.reciprocal %72 {approx = true} : vector<8x1xf32> -> vector<8x1xf32>
    %74 = vector.broadcast %73 : vector<8x1xf32> to vector<8x8xf32>
    %75 = arith.mulf %70, %74 : vector<8x8xf32>
    %76 = arith.truncf %75 : vector<8x8xf32> to vector<8x8xbf16>
    %cst_35 = arith.constant dense<0.000000e+00> : vector<8x8xf32>
    %77 = tpu.matmul %76, %64, %cst_35 {dimension_numbers = #tpu.dot_dimension_numbers<[1], [0], [0], [1], [0, 0, 1, 1], [], []>} : vector<8x8xbf16>, vector<8x8xbf16>, vector<8x8xf32> -> vector<8x8xf32>
    %78 = arith.truncf %77 : vector<8x8xf32> to vector<8x8xbf16>
    %c0_36 = arith.constant 0 : index
    %c16 = arith.constant 16 : index
    %79 = vector.load %arg11[%c0_36, %c16] : memref<8x32xbf16, #tpu.memory_space<vmem>>, vector<8x8xbf16>
    tpu.vector_store %arg11[%c0_36, %c16], %78 {strides = array<i32>} : memref<8x32xbf16, #tpu.memory_space<vmem>>, vector<8x8xbf16>,
    %80 = vector.extract_strided_slice %23 {offsets = [0, 24], sizes = [8, 8], strides = [1, 1]} : vector<8x32xbf16> to vector<8x8xbf16>
    %81 = vector.extract_strided_slice %24 {offsets = [0, 24], sizes = [8, 8], strides = [1, 1]} : vector<8x32xbf16> to vector<8x8xbf16>
    %82 = vector.extract_strided_slice %25 {offsets = [0, 24], sizes = [8, 8], strides = [1, 1]} : vector<8x32xbf16> to vector<8x8xbf16>
    %cst_37 = arith.constant dense<0.000000e+00> : vector<8x8xf32>
    %83 = tpu.matmul %80, %81, %cst_37 {dimension_numbers = #tpu.dot_dimension_numbers<[1], [1], [0], [0], [0, 0, 1, 0], [], []>} : vector<8x8xbf16>, vector<8x8xbf16>, vector<8x8xf32> -> vector<8x8xf32>
    %cst_38 = arith.constant dense<0xFF800000> : vector<8xf32>
    %84 = vector.multi_reduction <maximumf>, %83, %cst_38 [1] : vector<8x8xf32> to vector<8xf32>
    %85 = vector.shape_cast %84 : vector<8xf32> to vector<8x1xf32>
    %86 = vector.broadcast %85 : vector<8x1xf32> to vector<8x8xf32>
    %87 = arith.subf %83, %86 : vector<8x8xf32>
    %88 = math.exp %87 : vector<8x8xf32>
    %cst_39 = arith.constant dense<0.000000e+00> : vector<8xf32>
    %89 = vector.multi_reduction <add>, %88, %cst_39 [1] : vector<8x8xf32> to vector<8xf32>
    %90 = vector.shape_cast %89 : vector<8xf32> to vector<8x1xf32>
    %91 = tpu.reciprocal %90 {approx = true} : vector<8x1xf32> -> vector<8x1xf32>
    %92 = vector.broadcast %91 : vector<8x1xf32> to vector<8x8xf32>
    %93 = arith.mulf %88, %92 : vector<8x8xf32>
    %94 = arith.truncf %93 : vector<8x8xf32> to vector<8x8xbf16>
    %cst_40 = arith.constant dense<0.000000e+00> : vector<8x8xf32>
    %95 = tpu.matmul %94, %82, %cst_40 {dimension_numbers = #tpu.dot_dimension_numbers<[1], [0], [0], [1], [0, 0, 1, 1], [], []>} : vector<8x8xbf16>, vector<8x8xbf16>, vector<8x8xf32> -> vector<8x8xf32>
    %96 = arith.truncf %95 : vector<8x8xf32> to vector<8x8xbf16>
    %c0_41 = arith.constant 0 : index
    %c24 = arith.constant 24 : index
    %97 = vector.load %arg11[%c0_41, %c24] : memref<8x32xbf16, #tpu.memory_space<vmem>>, vector<8x8xbf16>
    tpu.vector_store %arg11[%c0_41, %c24], %96 {strides = array<i32>} : memref<8x32xbf16, #tpu.memory_space<vmem>>, vector<8x8xbf16>,
    %c0_42 = arith.constant 0 : index
    %c0_43 = arith.constant 0 : index
    %98 = vector.load %arg11[%c0_42, %c0_43] : memref<8x32xbf16, #tpu.memory_space<vmem>>, vector<8x32xbf16>
    %c0_44 = arith.constant 0 : index
    %c0_45 = arith.constant 0 : index
    %99 = vector.load %arg7[%c0_44, %c0_45] : memref<32x32xbf16, #tpu.memory_space<vmem>>, vector<32x32xbf16>
    %cst_46 = arith.constant dense<0.000000e+00> : vector<8x32xf32>
    %100 = tpu.matmul %98, %99, %cst_46 {dimension_numbers = #tpu.dot_dimension_numbers<[1], [0], [0], [1], [0, 0, 1, 1], [], []>} : vector<8x32xbf16>, vector<32x32xbf16>, vector<8x32xf32> -> vector<8x32xf32>
    %c0_47 = arith.constant 0 : index
    %c0_48 = arith.constant 0 : index
    %101 = vector.load %arg9[%c0_47, %c0_48] : memref<1x32xf32, #tpu.memory_space<vmem>>, vector<1x32xf32>
    %102 = vector.broadcast %101 : vector<1x32xf32> to vector<8x32xf32>
    %103 = arith.addf %100, %102 : vector<8x32xf32>
    %c0_49 = arith.constant 0 : index
    %c0_50 = arith.constant 0 : index
    %c0_51 = arith.constant 0 : index
    %104 = vector.load %arg10[%c0_49, %c0_50, %c0_51] : memref<1x8x32xf32, #tpu.memory_space<vmem>>, vector<1x8x32xf32>
    %105 = vector.shape_cast %104 : vector<1x8x32xf32> to vector<8x32xf32>
    %106 = vector.shape_cast %103 : vector<8x32xf32> to vector<1x8x32xf32>
    tpu.vector_store %arg10[%c0_49, %c0_50, %c0_51], %106 {strides = array<i32>} : memref<1x8x32xf32, #tpu.memory_space<vmem>>, vector<1x8x32xf32>,
    return
  }
  func.func @transform_0(%arg0: i32) -> (i32, i32, i32) {
    %c0_i32 = arith.constant 0 : i32
    %c0_i32_0 = arith.constant 0 : i32
    %c0_i32_1 = arith.constant 0 : i32
    return %arg0, %c0_i32, %c0_i32_0 : i32, i32, i32
  }
  func.func @transform_1(%arg0: i32) -> (i32, i32, i32) {
    %c0_i32 = arith.constant 0 : i32
    %c0_i32_0 = arith.constant 0 : i32
    %c0_i32_1 = arith.constant 0 : i32
    return %arg0, %c0_i32, %c0_i32_0 : i32, i32, i32
  }
  func.func @transform_2(%arg0: i32) -> (i32, i32, i32) {
    %c0_i32 = arith.constant 0 : i32
    %c0_i32_0 = arith.constant 0 : i32
    %c0_i32_1 = arith.constant 0 : i32
    return %arg0, %c0_i32, %c0_i32_0 : i32, i32, i32
  }
  func.func @transform_3(%arg0: i32) -> (i32, i32) {
    %c0_i32 = arith.constant 0 : i32
    %c0_i32_0 = arith.constant 0 : i32
    %c0_i32_1 = arith.constant 0 : i32
    return %c0_i32, %c0_i32_0 : i32, i32
  }
  func.func @transform_4(%arg0: i32) -> (i32, i32) {
    %c0_i32 = arith.constant 0 : i32
    %c0_i32_0 = arith.constant 0 : i32
    %c0_i32_1 = arith.constant 0 : i32
    return %c0_i32, %c0_i32_0 : i32, i32
  }
  func.func @transform_5(%arg0: i32) -> (i32, i32) {
    %c0_i32 = arith.constant 0 : i32
    %c0_i32_0 = arith.constant 0 : i32
    %c0_i32_1 = arith.constant 0 : i32
    return %c0_i32, %c0_i32_0 : i32, i32
  }
  func.func @transform_6(%arg0: i32) -> (i32, i32) {
    %c0_i32 = arith.constant 0 : i32
    %c0_i32_0 = arith.constant 0 : i32
    %c0_i32_1 = arith.constant 0 : i32
    return %c0_i32, %c0_i32_0 : i32, i32
  }
  func.func @transform_7(%arg0: i32) -> (i32, i32) {
    %c0_i32 = arith.constant 0 : i32
    %c0_i32_0 = arith.constant 0 : i32
    %c0_i32_1 = arith.constant 0 : i32
    return %c0_i32, %c0_i32_0 : i32, i32
  }
  func.func @transform_8(%arg0: i32) -> (i32, i32) {
    %c0_i32 = arith.constant 0 : i32
    %c0_i32_0 = arith.constant 0 : i32
    %c0_i32_1 = arith.constant 0 : i32
    return %c0_i32, %c0_i32_0 : i32, i32
  }
  func.func @transform_9(%arg0: i32) -> (i32, i32, i32) {
    %c0_i32 = arith.constant 0 : i32
    %c0_i32_0 = arith.constant 0 : i32
    %c0_i32_1 = arith.constant 0 : i32
    return %arg0, %c0_i32, %c0_i32_0 : i32, i32, i32
  }
}

</mosaic_0001>

<bundles_post_ra>
// kernel: tpu_custom_call.1
= control target key start
LH: loop header
LB: loop body
LE: loop exit
PB: predicated region body
PF: predicated region fallthrough
CT: control target
= control target key end

     0   :  { %s1901_s0 = inlined_call_operand.hbm [shape: bf16[2,8,32], index: 0, kind: input, shape index: {}]   ;;  %s1902_s1 = inlined_call_operand.hbm [shape: bf16[2,8,32], index: 1, kind: input, shape index: {}]   ;;  %s1903_s2 = inlined_call_operand.hbm [shape: bf16[2,8,32], index: 2, kind: input, shape index: {}]   ;;  %s1904_s3 = inlined_call_operand.hbm [shape: bf16[32,32], index: 3, kind: input, shape index: {}]   ;;  %s1905_s4 = inlined_call_operand.hbm [shape: bf16[32,32], index: 4, kind: input, shape index: {}]   ;;  %s1906_s5 = inlined_call_operand.hbm [shape: bf16[32,32], index: 5, kind: input, shape index: {}]   ;;  %s1907_s6 = inlined_call_operand.hbm [shape: bf16[32,32], index: 6, kind: input, shape index: {}]   ;;  %s1908_s7 = inlined_call_operand.vmem [shape: f32[3,32], index: 7, kind: input, shape index: {}]   ;;  %s1909_s8 = inlined_call_operand.vmem [shape: f32[1,32], index: 8, kind: input, shape index: {}]   ;;  %s1910_s9 = inlined_call_operand.hbm [shape: f32[2,8,32], index: 9, kind: output, shape index: {}]  }
   0x1   :  { %1921 = sst [smem:[#allocation25_spill]] %s1902_s1 }
   0x2   :  { %1922 = sst [smem:[#allocation26_spill]] %s1904_s3 }
   0x3   :  { %1923 = sst [smem:[#allocation27_spill]] %s1905_s4 }
   0x4   :  { %1924 = sst [smem:[#allocation28_spill]] %s1906_s5 }
   0x5   :  { %1925 = sst [smem:[#allocation29_spill]] %s1907_s6 }
   0x6   :  { %14 = vsyncpa [#allocation4], 0 }
   0x7   :  { %16 = vsyncpa [#allocation4 + $0x1], 0 }
   0x8   :  { %17 = vsyncpa [#allocation7], 0 }
   0x9   :  { %19 = vsyncpa [#allocation7 + $0x1], 0 }
   0xa   :  { %20 = vsyncpa [#allocation10], 0 }
   0xb   :  { %21 = vsyncpa [#allocation13], 0 }
   0xc   :  { %22 = vsyncpa [#allocation5], 0 }
   0xd   :  { %24 = vsyncpa [#allocation5 + $0x1], 0  ;;  %s1615_s30 = smov 0   ;;  %s1617_s10 = smov 0  }
   0xe   :  { %s1619_s11 = smov 0   ;;  %s1621_s12 = smov 0  }
   0xf LB: > { %1926 = sst [smem:[#allocation21_spill]] %s1551_s12  ;;  %s1639_s16 = sadd.s32 4294967295, %s1551_s12   ;;  %s1551_s12 = sphi %s1621_s12, %s1951_s12   ;;  %s1547_s11 = sphi %s1619_s11, %s1955_s11   ;;  %s1543_s10 = sphi %s1617_s10, %s1954_s10   ;;  %s1539_s30 = sphi %s1615_s30, %s1953_s30  }
  0x10   : > { %s1927_s3 = sld [smem:[#allocation26_spill]]  ;;  %p1061_p0 = scmp.ge.s32.totalorder %s1551_s12, 1 }
  0x11   : > { %p1919_p1 = scmp.eq.s32.totalorder %s1639_s16, 0  ;;  %p265_p2 = scmp.lt.s32.totalorder %s1551_s12, 3 }
  0x12   : > { %s1553_s18 = smov [#allocation9]   ;;  %s1929_s5 = sld [smem:[#allocation28_spill]] }
  0x13   : > { %p1644_p3 = pnand %p1061_p0, %p265_p2  ;;  %s278_s19 = sshll.u32 %s1553_s18, 4  ;;  %s279_s19 = int_to_ptr.vmem [resolvable:$true] %s278_s19 }
  0x14   : > { %s1554_s24 = smov [#allocation12]   ;;  %s1911_s26 = smov 64  }
  0x15   : > { %p1162_p4 = pneg %p1644_p3  ;;  %s306_s25 = sshll.u32 %s1554_s24, 4  ;;  %s307_s25 = int_to_ptr.vmem [resolvable:$true] %s306_s25 }
  0x16   : > { %s276_s15 = sshll.u32 %s1927_s3, 4  ;;  %s1913_s27 = smov 4   ;;  %s277_s15 = int_to_ptr.hbm [resolvable:$true] %s276_s15 }
  0x17   : > { %p1656_p6 = pnand %p1162_p4, %p1919_p1  ;;  %s1060_s28 = sadd.s32 4294967294, %s1551_s12  }
  0x18   : > { %s304_s22 = sshll.u32 %s1929_s5, 4  ;;  %s1672_s29 = sadd.s32 1, %s1551_s12   ;;  %s305_s22 = int_to_ptr.hbm [resolvable:$true] %s304_s22 }
  0x19   : > { %1165 = dma.hbm_to_vmem [thread:$0]  (!%p1656_p6), %s277_s15, 256, %s279_s19, [#allocation10], %s1911_s26, %s1911_s26, %s1913_s27  }
  0x1a   : > { %1171 = dma.hbm_to_vmem [thread:$0]  (!%p1656_p6), %s305_s22, 256, %s307_s25, [#allocation13], %s1911_s26, %s1911_s26, %s1913_s27  }
  0x1b   : > { %1931 = sst [smem:[#allocation22_spill]] %s1672_s29  ;;  %s34_s13 = ssub.s32 %s1551_s12, %s1672_s29 }
  0x1c   : > { %s37_s14 = sadd.s32 1, %s1547_s11  ;;  %p35_p7 = scmp.eq.s32.totalorder %s34_s13, 0 }
  0x1d   : > { %p44_p8 = scmp.ne.s32.totalorder %s1547_s11, %s1543_s10  ;;  %p45_p9 = scmp.eq.s32.totalorder %s1551_s12, 0 }
  0x1e   : > { %p50_p10 = scmp.ne.s32.totalorder %s1543_s10, %s1539_s30  ;;  %p252_p13 = scmp.eq.s32.totalorder %s1639_s16, 1 }
  0x1f   : > { %s1683_s15 = scalar_select %p35_p7, %s1547_s11, %s37_s14  }
  0x20   : > { %p46_p11 = por %p45_p9, %p44_p8  ;;  %p1687_p12 = por %p1919_p1, %p50_p10 }
  0x21   : > { %1932 = sst [smem:[#allocation23_spill]] %s1683_s15  ;;  %p258_p0 = scmp.eq.s32.totalorder %s1060_s28, 1 }
  0x22   : > { %p1193_p2 = scmp.lt.s32.totalorder %s1551_s12, 2  ;;  %s1915_s19 = sand.u32 1, %s1547_s11  }
  0x23   : > { %p1694_p4 = por %p252_p13, %p44_p8  ;;  %p1698_p5 = por %p258_p0, %p50_p10 }
  0x24   : > { %s1704_s22 = sshll.u32 %s1915_s19, 2  ;;  %s1707_s24 = sshll.u32 %s1551_s12, 2 }
  0x25   : > { %s1935_s21 = scalar_select %p1698_p5, 1, 0 }
  0x26   : > { %p1709_p7 = pnand %p1193_p2, %p46_p11  ;;  %s359_s28 = sand.u32 1, %s1551_s12  }
  0x27   : > { %1936 = sst [smem:[#allocation24_spill]] %s1935_s21  ;;  %s363_s3 = scalar_lea.vmem [#allocation6], %s1704_s22 }
  0x28   : > { %s1938_s1 = sld [smem:[#allocation25_spill]]  ;;  %s371_s5 = sshll.u32 %s363_s3, 4  ;;  %s372_s5 = int_to_ptr.vmem [resolvable:$true] %s371_s5 }
  0x29   : > { %s1719_s19 = scalar_lea.sflag [#allocation7], %s359_s28  ;;  %p1327_p9 = pneg %p1709_p7 }
  0x2e   : > { %s367_s26 = scalar_lea.hbm %s1938_s1, %s1707_s24 }
  0x2f   : > { %s369_s27 = sshll.u32 %s367_s26, 4  ;;  %s1330_s26 = scalar_lea.hbm %s1938_s1, 8  ;;  %s370_s27 = int_to_ptr.hbm [resolvable:$true] %s369_s27 }
  0x30   : > { %s1323_s15 = sshra.s32 %s370_s27, 4  ;;  %s1324_s15 = int_to_ptr.hbm [resolvable:$true] %s1323_s15 }
  0x31   : > { %s1325_s29 = scalar_lea.hbm %s1324_s15, 4  ;;  %p1331_p13 = scmp.lt.s32.totalorder %s1324_s15, %s1938_s1 }
  0x32   : > { %p1326_p8 = scmp.ne.s32.totalorder %s1324_s15, %s1325_s29  ;;  %p1332_p0 = scmp.lt.s32.totalorder %s1330_s26, %s1325_s29 }
  0x34   : > { %p1328_p10 = pnand %p1327_p9, %p1326_p8  ;;  %p1333_p2 = por %p1332_p0, %p1331_p13 }
  0x36   : > { %p1329_p11 = pneg %p1328_p10 }
  0x38   : > { %p1334_p1 = pnand %p1333_p2, %p1329_p11 }
  0x3a   : > { %1337 = shalt.err (!%p1334_p1)
}
  0x3b   : > { %1181 = dma.hbm_to_vmem [thread:$0]  (!%p1709_p7), %s370_s27, 64, %s372_s5, %s1719_s19  }
  0x3c   : > { %s1939_s4 = sld [smem:[#allocation27_spill]]  ;;  %s1557_s13 = smov [#allocation11]  }
  0x3d   : > { %s292_s15 = sshll.u32 %s1557_s13, 4  ;;  %s1940_s6 = sld [smem:[#allocation29_spill]]  ;;  %s293_s15 = int_to_ptr.vmem [resolvable:$true] %s292_s15 }
  0x3e   : > { %s1941_s3 = smov 4   ;;  %s1942_s1 = smov 64  }
  0x3f   : > { %s1558_s5 = smov [#allocation14]   ;;  %s348_s13 = scalar_lea.hbm %s1901_s0, %s1707_s24 }
  0x40   : > { %s320_s27 = sshll.u32 %s1558_s5, 4  ;;  %s344_s29 = scalar_lea.vmem [#allocation3], %s1704_s22  ;;  %s321_s27 = int_to_ptr.vmem [resolvable:$true] %s320_s27 }
  0x41   : > { %s352_s26 = sshll.u32 %s344_s29, 4  ;;  %s353_s26 = int_to_ptr.vmem [resolvable:$true] %s352_s26 }
  0x42   : > { %s290_s12 = sshll.u32 %s1939_s4, 4  ;;  %s350_s4 = sshll.u32 %s348_s13, 4  ;;  %s291_s12 = int_to_ptr.hbm [resolvable:$true] %s290_s12  ;;  %s351_s4 = int_to_ptr.hbm [resolvable:$true] %s350_s4 }
  0x43   : > { %s318_s14 = sshll.u32 %s1940_s6, 4  ;;  %s1413_s6 = sshra.s32 %s351_s4, 4  ;;  %s319_s14 = int_to_ptr.hbm [resolvable:$true] %s318_s14  ;;  %s1414_s6 = int_to_ptr.hbm [resolvable:$true] %s1413_s6 }
  0x44   : > { %1168 = dma.hbm_to_vmem [thread:$0]  (!%p1656_p6), %s291_s12, 256, %s293_s15, [#allocation10], %s1942_s1, %s1942_s1, %s1941_s3  }
  0x45   : > { %1174 = dma.hbm_to_vmem [thread:$0]  (!%p1656_p6), %s319_s14, 256, %s321_s27, [#allocation13], %s1942_s1, %s1942_s1, %s1941_s3  }
  0x46   : > { %s1943_s12 = sand.u32 1, %s1547_s11   ;;  %s1415_s5 = scalar_lea.hbm %s1414_s6, 4 }
  0x47   : > { %s341_s15 = scalar_lea.sflag [#allocation4], %s1943_s12  ;;  %p1416_p1 = scmp.ne.s32.totalorder %s1414_s6, %s1415_s5 }
  0x48   : > { %s1420_s14 = scalar_lea.hbm %s1901_s0, 8  ;;  %p1421_p6 = scmp.lt.s32.totalorder %s1414_s6, %s1901_s0 }
  0x49   : > { %p1418_p8 = pnand %p1416_p1, %p1327_p9  ;;  %p1422_p11 = scmp.lt.s32.totalorder %s1420_s14, %s1415_s5 }
  0x4b   : > { %p1419_p10 = pneg %p1418_p8  ;;  %p1423_p13 = por %p1422_p11, %p1421_p6 }
  0x4d   : > { %p1424_p0 = pnand %p1423_p13, %p1419_p10 }
  0x4f   : > { %1427 = shalt.err (!%p1424_p0)
}
  0x50   : > { %1178 = dma.hbm_to_vmem [thread:$0]  (!%p1709_p7), %s351_s4, 64, %s353_s26, %s341_s15  }
  0x51   : > { %s386_s13 = scalar_lea.hbm %s1903_s2, %s1707_s24  ;;  %s382_s29 = scalar_lea.vmem [#allocation8], %s1704_s22 }
  0x52   : > { %s390_s12 = sshll.u32 %s382_s29, 4  ;;  %s388_s1 = sshll.u32 %s386_s13, 4  ;;  %s391_s12 = int_to_ptr.vmem [resolvable:$true] %s390_s12  ;;  %s389_s1 = int_to_ptr.hbm [resolvable:$true] %s388_s1 }
  0x53   : > { %s1443_s6 = sshra.s32 %s389_s1, 4  ;;  %s1450_s4 = scalar_lea.hbm %s1903_s2, 8  ;;  %s1444_s6 = int_to_ptr.hbm [resolvable:$true] %s1443_s6 }
  0x54   : > { %s1445_s5 = scalar_lea.hbm %s1444_s6, 4  ;;  %p1451_p10 = scmp.lt.s32.totalorder %s1444_s6, %s1903_s2 }
  0x55   : > { %p1446_p2 = scmp.ne.s32.totalorder %s1444_s6, %s1445_s5  ;;  %p1452_p6 = scmp.lt.s32.totalorder %s1450_s4, %s1445_s5 }
  0x57   : > { %p1448_p1 = pnand %p1446_p2, %p1327_p9  ;;  %p1453_p11 = por %p1452_p6, %p1451_p10 }
  0x59   : > { %p1449_p8 = pneg %p1448_p1 }
  0x5b   : > { %p1454_p13 = pnand %p1453_p11, %p1449_p8 }
  0x5d   : > { %1457 = shalt.err (!%p1454_p13)
}
  0x5e   : > { %1184 = dma.hbm_to_vmem [thread:$0]  (!%p1709_p7), %s389_s1, 64, %s391_s12, %s1719_s19  }
  0x5f   : > { %399 = sbr.rel (%p1644_p3) target bundleno = 1190 (0x4a6), region = 56  ;;  %s1789_s22 = sand.u32 (!%p1644_p3), 1, %s1543_s10  }
  0x60   : > { %s1792_s24 = sshll.u32 (!%p1644_p3), %s1789_s22, 2  ;;  %s402_s3 = scalar_lea.sflag (!%p1644_p3), [#allocation4], %s1789_s22 }
  0x61   : > { %s405_s27 = scalar_lea.vmem (!%p1644_p3), [#allocation3], %s1792_s24 }
  0x64   : > { %1518 = dma.done.wait (%p1687_p12), %s402_s3, 64  }
  0x65   : > { %1520 = vsyncadd (%p1687_p12), %s402_s3, 4294967232  ;;  %s411_s17 = sand.u32 1, %s1639_s16   ;;  %s415_s25 = scalar_lea.vmem [#allocation6], %s1792_s24 }
  0x66   : > { %s412_s19 = scalar_lea.sflag [#allocation7], %s411_s17 }
  0x67   : > { %1522 = dma.done.wait (%p1687_p12), %s412_s19, 128  }
  0x68   : > { %1524 = vsyncadd (%p1687_p12), %s412_s19, 4294967168  ;;  %s425_s21 = scalar_lea.vmem [#allocation8], %s1792_s24  ;;  %p1944_p3 = scmp.eq.s32.totalorder %s1639_s16, 0 }
  0x6a   : > { %1526 = dma.done.wait (%p1944_p3), [#allocation10], 512   ;;  %p1945_p7 = pmov %p1944_p3 }
  0x6b   : > { %p1946_p9 = pmov %p1944_p3 }
  0x6c   : > { %1528 = vsyncadd (%p1945_p7), [#allocation10], 4294966784 }
  0x6d   : > { %1530 = dma.done.wait (%p1946_p9), [#allocation13], 512   ;;  %p1947_p0 = pmov %p1944_p3 }
  0x6e   : > { %v1131_v0 = vld [vmem:[#allocation9 + $0x8] sm:$0xff]  ;;  %v1133_v1 = vld [vmem:[#allocation11 + $0x8] sm:$0xff]  ;;  %v1130_v2 = vld [vmem:[#allocation9] sm:$0xff]  ;;  %vm513_vm0 = vcmask 261120   ;;  %vm602_vm1 = vcmask 64512   ;;  %s1559_s12 = smov 112  }
  0x6f   : > { %1532 = vsyncadd (%p1947_p0), [#allocation13], 4294966784  ;;  %523 = vmatpush.bf16.msra.mxu0 %v1131_v0  ;;  %558 = vmatpush.bf16.msra.mxu1 %v1133_v1  ;;  %v1132_v3 = vld [vmem:[#allocation11] sm:$0xff]  ;;  %v492_v4 = vld [vmem:[%s405_s27] sm:$0xf]  ;;  %s1560_s1 = smov 120  }
  0x70   : > { %v493_v5 = vld [vmem:[%s415_s25] sm:$0xf]  ;;  %v1243_v6 = vld [vmem:[%s1908_s7] ss:$0 sm:$0xff]  ;;  %v1244_v7 = vld [vmem:[%s1908_s7 + $0x1] ss:$0 sm:$0xff] }
  0x71   : > { %s1561_s6 = smov 104   ;;  %v1135_v22 = vld [vmem:[#allocation12 + $0x8] sm:$0xff]  ;;  %v1134_v35 = vld [vmem:[#allocation12] sm:$0xff]  ;;  %v494_v36 = vld [vmem:[%s425_s21] sm:$0xf]  ;;  %vm637_vm2 = vcmask 1043456  }
  0x72   : > { %592 = vmatpush.bf16.msra.mxu2 %v1135_v22  ;;  %v1245_v51 = vld [vmem:[%s1908_s7 + $0x2] ss:$0 sm:$0xff]  ;;  %vm655_vm3 = vcmask 60416   ;;  %s1562_s14 = smov 8   ;;  %s1563_s4 = smov 24   ;;  %vm727_vm4 = vcmask 126016  }
  0x73   : > { %524 = vmatpush.bf16.msra.mxu0 %v1130_v2  ;;  %559 = vmatpush.bf16.msra.mxu1 %v1132_v3  ;;  %s1564_s26 = smov 16   ;;  %vm790_vm5 = vcmask 191616   ;;  %vm853_vm6 = vcmask 257216   ;;  %s1127_s15 = sshll.u32 %s1639_s16, 3 }
  0x74   : > { %s1081_s24 = sshll.u32 %s1789_s22, 3  ;;  %s904_s17 = scalar_lea.hbm %s1910_s9, %s1127_s15 }
  0x75   : > { %s490_s21 = scalar_lea.vmem [#allocation15], %s1081_s24  ;;  %s908_s28 = sshll.u32 %s904_s17, 4  ;;  %s909_s28 = int_to_ptr.hbm [resolvable:$true] %s908_s28 }
  0x76   : > { %1090 = vmatmul.msk.bf16.vlgmr.msra.gmra.mxu0 %vm513_vm0, %v492_v4  ;;  %1099 = vmatmul.msk.bf16.vlgmr.msra.gmra.mxu1 %vm513_vm0, %v493_v5  ;;  %s906_s18 = sshll.u32 %s490_s21, 4  ;;  %s894_s16 = scalar_lea.sflag [#allocation5], %s1789_s22  ;;  %s907_s18 = int_to_ptr.vmem [resolvable:$true] %s906_s18 }
  0x77   : > { %593 = vmatpush.bf16.msra.mxu2 %v1134_v35  ;;  %s1487_s13 = sshra.s32 %s909_s28, 4  ;;  %s1488_s13 = int_to_ptr.hbm [resolvable:$true] %s1487_s13 }
  0x78   : > { %s1489_s29 = scalar_lea.hbm %s1488_s13, 8  ;;  %p1494_p8 = scmp.lt.s32.totalorder %s1488_s13, %s1910_s9 }
  0x79   : > { %p1490_p12 = scmp.ne.s32.totalorder %s1488_s13, %s1489_s29 }
  0x7a   : > { %1108 = vmatmul.msk.bf16.vlgmr.msra.gmra.mxu2 %vm513_vm0, %v494_v36 }
  0x7b   : > { %p1491_p2 = pnand %p1490_p12, %p1694_p4 }
  0x7d   : > { %p1492_p1 = pneg %p1491_p2 }
  0xf3   : > { %v526_v8 = vpop.f32.mrf.mxu0  ;;  %v561_v9 = vpop.f32.mrf.mxu1 }
  0xf4   : > { %v527_v10 = vadd.f32 %v1243_v6, %v526_v8  ;;  %v562_v11 = vadd.f32 %v1244_v7, %v561_v9 }
  0xf6   : > { %v530_v12 = vmul.f32 0.35355338, %v527_v10  ;;  %v600_v13 = vpack.c.bf16 %v562_v11, %v562_v11 }
  0xf8   : > { %v599_v14 = vpack.c.bf16 %v530_v12, %v530_v12  ;;  %v663_v15 = vunpack.c.l.b16 %v600_v13  ;;  %v607_v16 = vsel %vm602_vm1, %v600_v13, 0 }
  0xf9   : > { %616 = vmatpush.bf16.xpose.msra.mxu3 %v607_v16 }
  0xfa   : > { %v658_v17 = vunpack.c.l.b16 %v599_v14  ;;  %v664_v18 = vpack.c.b16 %v663_v15, %v663_v15 }
  0xfb   : > { %v528_v19 = vpop.f32.mrf.mxu0  ;;  %v563_v20 = vpop.f32.mrf.mxu1 }
  0xfc   : > { %731 = vrot.lane.b32.xlu1 %v664_v18, %s1559_s12  ;;  %665 = vrot.lane.b32.xlu0 %v664_v18, %s1560_s1  ;;  %v659_v21 = vpack.c.b16 %v658_v17, %v658_v17 }
  0xfd   : > { %v595_v52 = vpop.f32.mrf.mxu2 }
  0xfe   : > { %729 = vrot.lane.b32.xlu2 %v659_v21, %s1559_s12  ;;  %v596_v53 = vadd.f32 %v1245_v51, %v595_v52 }
 0x100   : > { %1109 = vmatmul.msk.bf16.vlgmr.msra.gmra.mxu3 %vm602_vm1, %v599_v14  ;;  %v601_v54 = vpack.c.bf16 %v596_v53, %v596_v53 }
 0x102   : > { %v699_v55 = vunpack.c.l.b16 %v601_v54  ;;  %v639_v56 = vsel %vm637_vm2, %v601_v54, 0 }
 0x103   : > { %648 = vmatpush.bf16.msrb.mxu0 %v639_v56 }
 0x104   : > { %794 = vrot.lane.b32.xlu1 %v664_v18, %s1561_s6  ;;  %660 = vrot.lane.b32.xlu0 %v659_v21, %s1560_s1  ;;  %v700_v57 = vpack.c.b16 %v699_v55, %v699_v55 }
 0x105   : > { %v597_v58 = vpop.f32.mrf.mxu2 }
 0x106   : > { %792 = vrot.lane.b32.xlu2 %v659_v21, %s1561_s6 }
 0x158   : > { %v730_v27 = vpop.permute.xlu2 %729 }
 0x160   : > { %v793_v33 = vpop.permute.xlu2 %792 }
 0x16e   : > { %v732_v23 = vpop.permute.xlu1 %731  ;;  %v666_v24 = vpop.permute.xlu0 %665 }
 0x16f   : > { %v671_v25 = vsel %vm602_vm1, %v666_v24, 0  ;;  %v737_v26 = vsel %vm602_vm1, %v732_v23, 0 }
 0x170   : > { %680 = vmatpush.bf16.xpose.msrb.mxu1 %v671_v25  ;;  %746 = vmatpush.bf16.xpose.msrb.mxu3 %v737_v26 }
 0x176   : > { %v795_v28 = vpop.permute.xlu1 %794  ;;  %v661_v29 = vpop.permute.xlu0 %660 }
 0x177   : > { %v800_v30 = vsel %vm602_vm1, %v795_v28, 0  ;;  %1111 = vmatmul.msk.bf16.vlgmr.msrb.gmra.mxu1 %vm602_vm1, %v661_v29  ;;  %1113 = vmatmul.msk.bf16.vlgmr.msrb.gmra.mxu3 %vm602_vm1, %v730_v27 }
 0x178   : > { %809 = vmatpush.bf16.xpose.msra.mxu1 %v800_v30 }
 0x183   : > { %v618_v31 = vpop.f32.mrf.mxu3 }
 0x184   : > { %v622_v32 = vsel %vm602_vm1, %v618_v31, -inf }
 0x185   : > { %623 = vmax.xlane.f32.xlu1 %v622_v32 }
 0x187   : > { %1115 = vmatmul.msk.bf16.vlgmr.msra.gmra.mxu1 %vm602_vm1, %v793_v33 }
 0x18b   : > { %v620_v34 = vpop.f32.mrf.mxu3 }
 0x1f4   : > { %v682_v37 = vpop.f32.mrf.mxu1 }
 0x1f5   : > { %v686_v38 = vsel %vm602_vm1, %v682_v37, -inf }
 0x1f6   : > { %687 = vmax.xlane.f32.xlu0 %v686_v38 }
 0x1f8   : > { %v624_v39 = vpop.xlane.xlu1 %623 }
 0x1f9   : > { %v625_v40 = vsub.f32 %v618_v31, %v624_v39 }
 0x1fa   : > { %v748_v41 = vpop.f32.mrf.mxu3 }
 0x1fb   : > { %v626_v42 = vmul.f32 1.442695, %v625_v40  ;;  %v752_v50 = vsel %vm602_vm1, %v748_v41, -inf }
 0x1fc   : > { %v684_v43 = vpop.f32.mrf.mxu1 }
 0x1fd   : > { %1247 = vpow2.f32 %v626_v42 }
 0x202   : > { %v750_v44 = vpop.f32.mrf.mxu3 }
 0x203   : > { %v1248_v45 = vpop.eup %1247 }
 0x204   : > { %v811_v46 = vpop.f32.mrf.mxu1  ;;  %v628_v47 = vsel %vm602_vm1, %v1248_v45, 0.0 }
 0x205   : > { %629 = vadd.xlane.f32.xlu1 %v628_v47  ;;  %v815_v48 = vsel %vm602_vm1, %v811_v46, -inf }
 0x206   : > { %816 = vmax.xlane.f32.xlu2 %v815_v48 }
 0x20c   : > { %v813_v49 = vpop.f32.mrf.mxu1 }
 0x20e   : > { %753 = vmax.xlane.f32.xlu2 %v752_v50  ;;  %v1246_v50 = vld [vmem:[%s1909_s8] ss:$0 sm:$0xff] }
 0x226   : > { %701 = vrot.lane.b32.xlu2 %v700_v57, %s1560_s1 }
 0x269   : > { %v688_v59 = vpop.xlane.xlu0 %687 }
 0x26a   : > { %v689_v60 = vsub.f32 %v682_v37, %v688_v59 }
 0x26c   : > { %v690_v61 = vmul.f32 1.442695, %v689_v60 }
 0x26e   : > { %1249 = vpow2.f32 %v690_v61 }
 0x274   : > { %v1250_v62 = vpop.eup %1249 }
 0x275   : > { %v692_v63 = vsel %vm602_vm1, %v1250_v62, 0.0 }
 0x276   : > { %693 = vadd.xlane.f32.xlu0 %v692_v63 }
 0x278   : > { %v630_v0 = vpop.xlane.xlu1 %629 }
 0x279   : > { %1251 = vrcp.f32 %v630_v0  ;;  %v817_v1 = vpop.xlane.xlu2 %816 }
 0x27a   : > { %v818_v2 = vsub.f32 %v811_v46, %v817_v1  ;;  %v1136_v46 = vld [vmem:[#allocation14] sm:$0xff] }
 0x27c   : > { %v819_v3 = vmul.f32 1.442695, %v818_v2 }
 0x27e   : > { %1253 = vpow2.f32 %v819_v3 }
 0x27f   : > { %v1252_v4 = vpop.eup %1251 }
 0x280   : > { %v632_v5 = vmul.f32 %v1252_v4, %v1248_v45  ;;  %v1137_v45 = vld [vmem:[#allocation14 + $0x8] sm:$0xff] }
 0x281   : > { %v754_v6 = vpop.xlane.xlu2 %753  ;;  %885 = vmatpush.bf16.msra.mxu3 %v1137_v45 }
 0x282   : > { %v755_v7 = vsub.f32 %v748_v41, %v754_v6  ;;  %v633_v8 = vpack.c.bf16 %v632_v5, %v632_v5 }
 0x284   : > { %v1254_v9 = vpop.eup %1253  ;;  %v756_v10 = vmul.f32 1.442695, %v755_v7  ;;  %1110 = vmatmul.msk.bf16.vlgmr.msrb.gmra.mxu0 %vm602_vm1, %v633_v8 }
 0x285   : > { %v821_v11 = vsel %vm602_vm1, %v1254_v9, 0.0  ;;  %886 = vmatpush.bf16.msra.mxu3 %v1136_v46 }
 0x286   : > { %1255 = vpow2.f32 %v756_v10  ;;  %822 = vadd.xlane.f32.xlu0 %v821_v11 }
 0x289   : > { %v702_v14 = vpop.permute.xlu2 %701 }
 0x28a   : > { %v707_v15 = vsel %vm637_vm2, %v702_v14, 0 }
 0x28b   : > { %716 = vmatpush.bf16.msrb.mxu2 %v707_v15 }
 0x28c   : > { %v1256_v12 = vpop.eup %1255 }
 0x28d   : > { %v758_v13 = vsel %vm602_vm1, %v1256_v12, 0.0 }
 0x28e   : > { %759 = vadd.xlane.f32.xlu1 %v758_v13 }
 0x29a   : > { %827 = vrot.lane.b32.xlu0 %v700_v57, %s1561_s6  ;;  %s1493_s6 = scalar_lea.hbm %s1910_s9, 16 }
 0x29b   : > { %p1495_p10 = scmp.lt.s32.totalorder %s1493_s6, %s1489_s29 }
 0x29d   : > { %p1496_p6 = por %p1495_p10, %p1494_p8 }
 0x29f   : > { %p1497_p11 = pnand %p1496_p6, %p1492_p1 }
 0x2a7   : > { %764 = vrot.lane.b32.xlu1 %v700_v57, %s1559_s12 }
 0x2e9   : > { %v694_v16 = vpop.xlane.xlu0 %693 }
 0x2ea   : > { %1257 = vrcp.f32 %v694_v16 }
 0x2f0   : > { %v1258_v17 = vpop.eup %1257 }
 0x2f1   : > { %v696_v18 = vmul.f32 %v1258_v17, %v1250_v62 }
 0x2f3   : > { %v697_v19 = vpack.c.bf16 %v696_v18, %v696_v18 }
 0x2f5   : > { %1112 = vmatmul.msk.bf16.vlgmr.msrb.gmra.mxu2 %vm602_vm1, %v697_v19 }
 0x2f9   : > { %v823_v20 = vpop.xlane.xlu0 %822 }
 0x2fa   : > { %1259 = vrcp.f32 %v823_v20 }
 0x300   : > { %v1260_v23 = vpop.eup %1259 }
 0x301   : > { %v650_v21 = vpop.f32.mrf.mxu0  ;;  %v825_v25 = vmul.f32 %v1260_v23, %v1254_v9  ;;  %v760_v26 = vpop.xlane.xlu1 %759 }
 0x302   : > { %v654_v22 = vpack.c.bf16 %v650_v21, %v650_v21  ;;  %1261 = vrcp.f32 %v760_v26 }
 0x303   : > { %v826_v29 = vpack.c.bf16 %v825_v25, %v825_v25 }
 0x304   : > { %656 = vst.msk [vmem:[#allocation2] sm:$0xf] %vm655_vm3, %v654_v22 }
 0x308   : > { %v1262_v30 = vpop.eup %1261 }
 0x309   : > { %v652_v24 = vpop.f32.mrf.mxu0  ;;  %v762_v31 = vmul.f32 %v1262_v30, %v1256_v12 }
 0x30b   : > { %v763_v34 = vpack.c.bf16 %v762_v31, %v762_v31 }
 0x30c   : > { %v828_v27 = vpop.permute.xlu0 %827 }
 0x30d   : > { %v833_v28 = vsel %vm637_vm2, %v828_v27, 0 }
 0x30e   : > { %842 = vmatpush.bf16.msra.mxu2 %v833_v28 }
 0x311   : > { %1116 = vmatmul.msk.bf16.vlgmr.msra.gmra.mxu2 %vm602_vm1, %v826_v29 }
 0x319   : > { %v765_v32 = vpop.permute.xlu1 %764 }
 0x31a   : > { %v770_v33 = vsel %vm637_vm2, %v765_v32, 0 }
 0x31b   : > { %779 = vmatpush.bf16.msra.mxu0 %v770_v33 }
 0x31e   : > { %1114 = vmatmul.msk.bf16.vlgmr.msra.gmra.mxu0 %vm602_vm1, %v763_v34 }
 0x378   : > { %v718_v35 = vpop.f32.mrf.mxu2 }
 0x379   : > { %v722_v36 = vpack.c.bf16 %v718_v35, %v718_v35 }
 0x37b   : > { %724 = vrot.lane.b32.xlu2 %v722_v36, %s1562_s14 }
 0x380   : > { %v720_v37 = vpop.f32.mrf.mxu2 }
 0x394   : > { %v844_v38 = vpop.f32.mrf.mxu2 }
 0x395   : > { %v848_v39 = vpack.c.bf16 %v844_v38, %v844_v38 }
 0x397   : > { %850 = vrot.lane.b32.xlu2 %v848_v39, %s1563_s4 }
 0x39b   : > { %v781_v40 = vpop.f32.mrf.mxu0 }
 0x39c   : > { %v785_v41 = vpack.c.bf16 %v781_v40, %v781_v40  ;;  %v846_v42 = vpop.f32.mrf.mxu2 }
 0x39e   : > { %787 = vrot.lane.b32.xlu0 %v785_v41, %s1564_s26 }
 0x3a3   : > { %v783_v43 = vpop.f32.mrf.mxu0 }
 0x3d5   : > { %v725_v44 = vpop.permute.xlu2 %724 }
 0x3d6   : > { %728 = vst.msk [vmem:[#allocation2] sm:$0xf] %vm727_vm4, %v725_v44 }
 0x3f1   : > { %v851_v48 = vpop.permute.xlu2 %850 }
 0x410   : > { %v788_v47 = vpop.permute.xlu0 %787 }
 0x411   : > { %791 = vst.msk [vmem:[#allocation2] sm:$0xf] %vm790_vm5, %v788_v47 }
 0x412   : > { %854 = vst.msk [vmem:[#allocation2] sm:$0xf] %vm853_vm6, %v851_v48 }
 0x419   : > { %v855_v49 = vld [vmem:[#allocation2] sm:$0xf] }
 0x41a   : > { %1125 = vmatmul.msk.bf16.vlgmr.msra.gmra.mxu3 %vm513_vm0, %v855_v49 }
 0x49d   : > { %v888_v51 = vpop.f32.mrf.mxu3 }
 0x49e   : > { %v889_v52 = vadd.f32 %v1246_v50, %v888_v51 }
 0x4a0   : > { %892 = vst.msk [vmem:[%s490_s21] sm:$0xff] %vm513_vm0, %v889_v52 }
 0x4a1   : > { %1500 = shalt.err (!%p1497_p11)
}
 0x4a2   : > { %1160 = dma.vmem_to_hbm [thread:$0]  (%p1694_p4), %s907_s18, 128, %s909_s28, %s894_s16  }
 0x4a5   : > { %v890_v53 = vpop.f32.mrf.mxu3 }
 0x4a6 PF: > { %s1949_s14 = sld [smem:[#allocation21_spill]]  ;;  %s920_s4 = sand.u32 1, %s1539_s30  }
 0x4a7   : > { %s921_s26 = scalar_lea.sflag [#allocation5], %s920_s4 }
 0x4ac   : > { %p1950_p13 = scmp.ge.s32.totalorder %s1949_s14, 2 }
 0x4ae   : > { %p1186_p3 = pnand %p1950_p13, %p1698_p5 }
 0x4b0   : > { %p1187_p7 = pneg %p1186_p3 }
 0x4b2   : > { %1534 = dma.done.wait (%p1187_p7), %s921_s26, 128  }
 0x4b3   : > { %1536 = vsyncadd (%p1187_p7), %s921_s26, 4294967168  ;;  %s1951_s12 = sld [smem:[#allocation22_spill]]  ;;  %s1953_s30 = smov %s1543_s10 }
 0x4b4   : > { %s1952_s15 = sld [smem:[#allocation23_spill]]  ;;  %s1954_s10 = smov %s1547_s11 }
 0x4b9   : > { %p27_p9 = scmp.ge.s32.totalorder %s1951_s12, 4  }
 0x4ba   : > { %s1955_s11 = smov %s1952_s15 }
 0x4bb   :  { %29 = sbr.rel (!%p27_p9) target bundleno = 15 (0xf), region = 141 }
 0x4c0   :  { %927 = vsyncpa [#allocation4], 1 }
 0x4c1   :  { %929 = vsyncpa [#allocation4 + $0x1], 1 }
 0x4c2   :  { %930 = vsyncpa [#allocation7], 1 }
 0x4c3   :  { %932 = vsyncpa [#allocation7 + $0x1], 1 }
 0x4c4   :  { %933 = vsyncpa [#allocation10], 1 }
 0x4c5   :  { %934 = vsyncpa [#allocation13], 1 }
 0x4c6   :  { %935 = vsyncpa [#allocation5], 1 }
 0x4c7   :  { %937 = vsyncpa [#allocation5 + $0x1], 1 }

</bundles_post_ra>
